<compile_context>
chip_gen: v7x
topology: tpu7x:2x2x1
jax: 0.10.0
libtpu: 0.0.40
codegen_flags: <defaults>
</compile_context>

<pallas_src>
import math

import jax
import jax.numpy as jnp
from jax.experimental import pallas as pl
from jax.experimental.pallas import tpu as pltpu


def _round_up(v, m):
    return ((v + m - 1) // m) * m


def _make_kernel(multi_k, has_bias):
    """Build a statically-specialized GEMM(+bias) kernel."""
    if multi_k:
        if has_bias:
            def kernel(x_ref, w_ref, b_ref, o_ref, acc_ref):
                k = pl.program_id(2)
                prod = jnp.dot(x_ref[...], w_ref[...],
                               preferred_element_type=jnp.float32)

                @pl.when(k == 0)
                def _init():
                    acc_ref[...] = prod

                @pl.when(k > 0)
                def _accum():
                    acc_ref[...] += prod

                @pl.when(k == pl.num_programs(2) - 1)
                def _finalize():
                    o_ref[...] = (acc_ref[...] + b_ref[...]).astype(o_ref.dtype)
        else:
            def kernel(x_ref, w_ref, o_ref, acc_ref):
                k = pl.program_id(2)
                prod = jnp.dot(x_ref[...], w_ref[...],
                               preferred_element_type=jnp.float32)

                @pl.when(k == 0)
                def _init():
                    acc_ref[...] = prod

                @pl.when(k > 0)
                def _accum():
                    acc_ref[...] += prod

                @pl.when(k == pl.num_programs(2) - 1)
                def _finalize():
                    o_ref[...] = acc_ref[...].astype(o_ref.dtype)
    else:
        if has_bias:
            def kernel(x_ref, w_ref, b_ref, o_ref):
                o_ref[...] = (jnp.dot(x_ref[...], w_ref[...],
                                      preferred_element_type=jnp.float32)
                              + b_ref[...]).astype(o_ref.dtype)
        else:
            def kernel(x_ref, w_ref, o_ref):
                o_ref[...] = jnp.dot(
                    x_ref[...], w_ref[...],
                    preferred_element_type=jnp.float32).astype(o_ref.dtype)
    return kernel


def right_mult_linear(x, weight, bias=None, *, tm=512, tn=1024, tk=2048,
                      compute_dtype=None):
    """x: (B, N, F_in), weight: (F_in, F_out), bias: (1, 1, F_out) or None.

    tm/tn/tk are maximum tile sizes; dims that fit entirely inside a tile are
    collapsed to the full dim (no reduction grid axis, no padding).
    compute_dtype (e.g. jnp.bfloat16) casts x/weight for the MXU; accumulation
    stays f32 and the output keeps x.dtype.
    """
    B, N, K = x.shape
    K2, F_out = weight.shape
    assert K == K2, "in_features mismatch"
    out_dtype = x.dtype
    M = B * N
    has_bias = bias is not None

    # ---- tile selection -------------------------------------------------
    tm_eff = M if M <= tm else _round_up(tm, 8)
    tn_eff = F_out if F_out <= tn else _round_up(tn, 128)

    if K <= tk:
        multi_k = False
        tk_eff = K
        nk = 1
        Kp = K
    else:
        multi_k = True
        nk = pl.cdiv(K, tk)
        tk_eff = _round_up(pl.cdiv(K, nk), 128)   # balanced K tiles, 128-aligned
        Kp = nk * tk_eff

    gi = pl.cdiv(M, tm_eff)
    gj = pl.cdiv(F_out, tn_eff)

    # Ensure >= 2 parallel blocks where possible so v7x megacore engages.
    if gi == 1 and gj == 1:
        if M >= 16:
            tm_eff = _round_up(pl.cdiv(M, 2), 8)
        elif F_out > 128:
            tn_eff = _round_up(pl.cdiv(F_out, 2), 128)
        gi = pl.cdiv(M, tm_eff)
        gj = pl.cdiv(F_out, tn_eff)

    # ---- operands (no M / F_out padding; K padded only if ragged & tiled) -
    x2d = x.reshape(M, K)
    w2d = weight
    if multi_k and Kp != K:
        # TODO(synk): could avoid this x copy with in-kernel K masking; rare
        # for GCN shapes (only when F_in exceeds one K tile and is ragged).
        x2d = jnp.pad(x2d, ((0, 0), (0, Kp - K)))
        w2d = jnp.pad(w2d, ((0, Kp - K), (0, 0)))

    if compute_dtype is not None:
        x2d = x2d.astype(compute_dtype)
        w2d = w2d.astype(compute_dtype)

    ops = [x2d, w2d]
    if has_bias:
        ops.append(bias.reshape(1, F_out).astype(jnp.float32))

    # ---- specs / grid -----------------------------------------------------
    if multi_k:
        x_spec = pl.BlockSpec((tm_eff, tk_eff), lambda i, j, k: (i, k))
        w_spec = pl.BlockSpec((tk_eff, tn_eff), lambda i, j, k: (k, j))
        b_spec = pl.BlockSpec((1, tn_eff), lambda i, j, k: (0, j))
        o_spec = pl.BlockSpec((tm_eff, tn_eff), lambda i, j, k: (i, j))
        grid = (gi, gj, nk)
        sem = ("parallel", "parallel", "arbitrary")
        scratch = [pltpu.VMEM((tm_eff, tn_eff), jnp.float32)]
    else:
        x_spec = pl.BlockSpec((tm_eff, tk_eff), lambda i, j: (i, 0))
        w_spec = pl.BlockSpec((tk_eff, tn_eff), lambda i, j: (0, j))
        b_spec = pl.BlockSpec((1, tn_eff), lambda i, j: (0, j))
        o_spec = pl.BlockSpec((tm_eff, tn_eff), lambda i, j: (i, j))
        grid = (gi, gj)
        sem = ("parallel", "parallel")
        scratch = []

    in_specs = [x_spec, w_spec] + ([b_spec] if has_bias else [])

    # ---- VMEM budget (double-buffered inputs/outputs + accumulator) -------
    in_item = jnp.dtype(x2d.dtype).itemsize
    out_item = jnp.dtype(out_dtype).itemsize
    est = (2 * (tm_eff * tk_eff + tk_eff * tn_eff) * in_item
           + 2 * tm_eff * tn_eff * out_item)
    if multi_k:
        est += tm_eff * tn_eff * 4
    if has_bias:
        est += 2 * tn_eff * 4
    vmem_limit = int(min(48 * 1024 * 1024,
                         max(32 * 1024 * 1024, est * 3 // 2)))

    # ---- cost estimate (includes x/w re-streaming across grid axes) -------
    bytes_accessed = (x2d.size * in_item * gj
                      + w2d.size * in_item * gi
                      + M * F_out * out_item
                      + (F_out * 4 * gi if has_bias else 0))
    cost = pl.CostEstimate(flops=2 * M * K * F_out,
                           transcendentals=0,
                           bytes_accessed=bytes_accessed)

    out2d = pl.pallas_call(
        _make_kernel(multi_k, has_bias),
        out_shape=jax.ShapeDtypeStruct((M, F_out), out_dtype),
        grid_spec=pltpu.PrefetchScalarGridSpec(
            num_scalar_prefetch=0,
            grid=grid,
            in_specs=in_specs,
            out_specs=o_spec,
            scratch_shapes=scratch,
        ),
        compiler_params=pltpu.CompilerParams(
            dimension_semantics=sem,
            vmem_limit_bytes=vmem_limit,
        ),
        cost_estimate=cost,
    )(*ops)

    return out2d.reshape(B, N, F_out)


def init_params(key, in_features, out_features, bias=True, dtype=jnp.float32):
    """Deterministic re-implementation of RightMultLinear.reset_parameters()."""
    stdv = 1.0 / math.sqrt(out_features)  # weight.size(1) == out_features
    kw, kb = jax.random.split(key)
    weight = jax.random.uniform(kw, (in_features, out_features),
                                dtype=dtype, minval=-stdv, maxval=stdv)
    b = None
    if bias:
        b = jax.random.uniform(kb, (1, 1, out_features),
                               dtype=dtype, minval=-stdv, maxval=stdv)
    return weight, b


if __name__ == "__main__":
    key = jax.random.PRNGKey(0)
    k_x, k_p = jax.random.split(key)

    # Small shapes consistent with the module: (batch, nodes, in_features).
    B, N, F_in, F_out = 2, 8, 32, 64
    x = jax.random.normal(k_x, (B, N, F_in), dtype=jnp.float32)
    weight, bias = init_params(k_p, F_in, F_out, bias=True)

    out = jax.block_until_ready(right_mult_linear(x, weight, bias))
    ref = jnp.matmul(x, weight) + bias
    assert out.shape == (B, N, F_out)
    assert jnp.allclose(out, ref, atol=1e-5, rtol=1e-5), "mismatch (bias)"

    # bias=None path (module default) — specialized no-bias kernel.
    out_nb = jax.block_until_ready(right_mult_linear(x, weight, None))
    assert jnp.allclose(out_nb, jnp.matmul(x, weight),
                        atol=1e-5, rtol=1e-5), "mismatch (no bias)"

    # bf16 MXU feed with f32 accumulation (loose tolerance).
    out_bf = jax.block_until_ready(
        right_mult_linear(x, weight, bias, compute_dtype=jnp.bfloat16))
    assert jnp.allclose(out_bf, ref, atol=3e-2, rtol=3e-2), "mismatch (bf16)"

    # Ragged, multi-tile case: exercises cdiv grids over M / F_out (no
    # wrapper padding) and the multi-K accumulator path (K padded to tiles).
    k_x2, k_p2 = jax.random.split(k_p)
    B2, N2, Fi2, Fo2 = 3, 100, 200, 300
    x2 = jax.random.normal(k_x2, (B2, N2, Fi2), dtype=jnp.float32)
    w2, b2 = init_params(k_p2, Fi2, Fo2, bias=True)
    out2 = jax.block_until_ready(
        right_mult_linear(x2, w2, b2, tm=64, tn=128, tk=128))
    ref2 = jnp.matmul(x2, w2) + b2
    assert jnp.allclose(out2, ref2, atol=1e-4, rtol=1e-4), "mismatch (ragged)"

    print("KERNEL_OK")
</pallas_src>

<mosaic_0001>
module attributes {stable_mosaic.version = 11 : i64} {
  func.func @kernel(%arg0: i32, %arg1: i32, %arg2: memref<8x32xf32, #tpu.memory_space<vmem>>, %arg3: memref<32x64xf32, #tpu.memory_space<vmem>>, %arg4: memref<1x64xf32, #tpu.memory_space<vmem>>, %arg5: memref<8x64xf32, #tpu.memory_space<vmem>>) attributes {dimension_semantics = [#tpu.dimension_semantics<parallel>, #tpu.dimension_semantics<parallel>], iteration_bounds = array<i64: 2, 1>, scalar_prefetch = 0 : i64, scratch_operands = 0 : i64, tpu.core_type = #tpu.core_type<tc>, window_params = [{transform_indices = @transform_0, window_bounds = array<i64: 8, 32>}, {transform_indices = @transform_1, window_bounds = array<i64: 32, 64>}, {transform_indices = @transform_2, window_bounds = array<i64: 1, 64>}, {transform_indices = @transform_3, window_bounds = array<i64: 8, 64>}]} {
    %c0 = arith.constant 0 : index
    %c0_0 = arith.constant 0 : index
    %0 = vector.load %arg2[%c0, %c0_0] : memref<8x32xf32, #tpu.memory_space<vmem>>, vector<8x32xf32>
    %c0_1 = arith.constant 0 : index
    %c0_2 = arith.constant 0 : index
    %1 = vector.load %arg3[%c0_1, %c0_2] : memref<32x64xf32, #tpu.memory_space<vmem>>, vector<32x64xf32>
    %cst = arith.constant dense<0.000000e+00> : vector<8x64xf32>
    %2 = tpu.matmul %0, %1, %cst {dimension_numbers = #tpu.dot_dimension_numbers<[1], [0], [0], [1], [0, 0, 1, 1], [], []>} : vector<8x32xf32>, vector<32x64xf32>, vector<8x64xf32> -> vector<8x64xf32>
    %c0_3 = arith.constant 0 : index
    %c0_4 = arith.constant 0 : index
    %3 = vector.load %arg4[%c0_3, %c0_4] : memref<1x64xf32, #tpu.memory_space<vmem>>, vector<1x64xf32>
    %4 = vector.broadcast %3 : vector<1x64xf32> to vector<8x64xf32>
    %5 = arith.addf %2, %4 : vector<8x64xf32>
    %c0_5 = arith.constant 0 : index
    %c0_6 = arith.constant 0 : index
    %6 = vector.load %arg5[%c0_5, %c0_6] : memref<8x64xf32, #tpu.memory_space<vmem>>, vector<8x64xf32>
    tpu.vector_store %arg5[%c0_5, %c0_6], %5 {strides = array<i32>} : memref<8x64xf32, #tpu.memory_space<vmem>>, vector<8x64xf32>,
    return
  }
  func.func @transform_0(%arg0: i32, %arg1: i32) -> (i32, i32) {
    %c0_i32 = arith.constant 0 : i32
    %c0_i32_0 = arith.constant 0 : i32
    return %arg0, %c0_i32 : i32, i32
  }
  func.func @transform_1(%arg0: i32, %arg1: i32) -> (i32, i32) {
    %c0_i32 = arith.constant 0 : i32
    %c0_i32_0 = arith.constant 0 : i32
    return %c0_i32, %arg1 : i32, i32
  }
  func.func @transform_2(%arg0: i32, %arg1: i32) -> (i32, i32) {
    %c0_i32 = arith.constant 0 : i32
    %c0_i32_0 = arith.constant 0 : i32
    return %c0_i32, %arg1 : i32, i32
  }
  func.func @transform_3(%arg0: i32, %arg1: i32) -> (i32, i32) {
    %c0_i32 = arith.constant 0 : i32
    return %arg0, %arg1 : i32, i32
  }
}

</mosaic_0001>

<bundles_post_ra>
// kernel: tpu_custom_call.1
= control target key start
LH: loop header
LB: loop body
LE: loop exit
PB: predicated region body
PF: predicated region fallthrough
CT: control target
= control target key end

     0   :  { %8 = vsyncpa [#allocation3], 0  ;;  %s951_s0 = inlined_call_operand.hbm [shape: f32[16,32], index: 0, kind: input, shape index: {}]   ;;  %s952_s1 = inlined_call_operand.hbm [shape: f32[32,64], index: 1, kind: input, shape index: {}]   ;;  %s953_s2 = inlined_call_operand.vmem [shape: f32[1,64], index: 2, kind: input, shape index: {}]   ;;  %s954_s3 = inlined_call_operand.hbm [shape: f32[16,64], index: 3, kind: output, shape index: {}]  }
   0x1   :  { %10 = vsyncpa [#allocation3 + $0x1], 0 }
   0x2   :  { %11 = vsyncpa [#allocation6], 0 }
   0x3   :  { %12 = vsyncpa [#allocation4], 0 }
   0x4   :  { %14 = vsyncpa [#allocation4 + $0x1], 0  ;;  %s734_s12 = smov 0   ;;  %s736_s13 = smov 0  }
   0x5   :  { %s738_s14 = smov 0   ;;  %s740_s15 = smov 0  }
   0x6   :  { %s742_s16 = smov 0   ;;  %s744_s17 = smov 0  }
   0x7 LB: > { %s442_s18 = sadd.s32 4294967295, %s704_s17   ;;  %s443_s19 = sadd.s32 4294967294, %s704_s17   ;;  %s704_s17 = sphi %s744_s17, %s20_s17   ;;  %s700_s16 = sphi %s742_s16, %s978_s16   ;;  %s696_s15 = sphi %s740_s15, %s977_s15   ;;  %s692_s14 = sphi %s738_s14, %s976_s14   ;;  %s688_s13 = sphi %s736_s13, %s975_s13   ;;  %s684_s12 = sphi %s734_s12, %s974_s12  }
   0x8   : > { %p52_p0 = scmp.ne.s32.totalorder %s688_s13, %s684_s12  ;;  %p768_p1 = scmp.eq.s32.totalorder %s442_s18, 0 }
   0x9   : > { %p772_p2 = scmp.eq.s32.totalorder %s442_s18, 1  ;;  %p136_p3 = scmp.eq.s32.totalorder %s443_s19, 1 }
   0xa   : > { %s959_s20 = scalar_select %p768_p1, 1, 0 }
   0xb   : > { %s960_s21 = scalar_select %p772_p2, 1, 0 }
   0xc   : > { %p778_p4 = por %p768_p1, %p52_p0  ;;  %p444_p5 = scmp.ge.s32.totalorder %s704_s17, 1 }
   0xd   : > { %p783_p6 = por %p136_p3, %p52_p0  ;;  %p143_p7 = scmp.lt.s32.totalorder %s704_s17, 3 }
   0xe   : > { %s961_s22 = scalar_select %p778_p4, 1, 0 }
   0xf   : > { %s962_s23 = scalar_select %p783_p6, 1, 0 }
  0x10   : > { %p788_p8 = pnand %p444_p5, %p143_p7  ;;  %s706_s25 = smov [#allocation5]  }
  0x11   : > { %s157_s26 = sshll.u32 %s706_s25, 4  ;;  %s32_s28 = sadd.s32 1, %s700_s16  ;;  %s158_s26 = int_to_ptr.vmem [resolvable:$true] %s157_s26 }
  0x12   : > { %s963_s24 = scalar_select %p788_p8, 1, 0 }
  0x13   : > { %p490_p9 = pneg %p788_p8  ;;  %s560_s4 = scalar_lea.hbm %s952_s1, 512 }
  0x14   : > { %p561_p12 = scmp.ne.s32.totalorder %s952_s1, %s560_s4  ;;  %p567_p5 = scmp.lt.u32.totalorder %s560_s4, %s952_s1 }
  0x15   : > { %p797_p11 = pnand %p490_p9, %p768_p1 }
  0x17   : > { %p562_p13 = pneg %p797_p11 }
  0x19   : > { %p563_p0 = pnand %p562_p13, %p561_p12 }
  0x1b   : > { %p564_p3 = pneg %p563_p0 }
  0x1d   : > { %p569_p7 = pnand %p567_p5, %p564_p3 }
  0x1f   : > { %572 = shalt.err (!%p569_p7)
}
  0x20   : > { %s573_s9 = scalar_lea.vmem %s158_s26, 512  ;;  %p581_p1 = scmp.lt.s32.totalorder %s158_s26, %s158_s26 }
  0x21   : > { %p574_p9 = scmp.ne.s32.totalorder %s158_s26, %s573_s9  ;;  %p582_p4 = scmp.lt.s32.totalorder %s573_s9, %s573_s9 }
  0x23   : > { %p576_p10 = pnand %p574_p9, %p562_p13  ;;  %p583_p8 = por %p582_p4, %p581_p1 }
  0x25   : > { %p577_p6 = pneg %p576_p10 }
  0x27   : > { %p584_p2 = pnand %p583_p8, %p577_p6 }
  0x29   : > { %587 = shalt.err (!%p584_p2)
}
  0x2a   : > { %s707_s10 = smov 128   ;;  %s708_s11 = smov 8  }
  0x2b   : > { %493 = dma.hbm_to_vmem [thread:$0]  (!%p797_p11), %s952_s1, 512, %s158_s26, [#allocation6], %s707_s10, %s707_s10, %s708_s11  }
  0x2c   : > { %p34_p1 = scmp.ge.s32.totalorder %s32_s28, 2  ;;  %s39_s25 = sadd.s32 1, %s692_s14 }
  0x2d   : > { %p46_p2 = scmp.ne.s32.totalorder %s692_s14, %s688_s13  ;;  %p47_p4 = scmp.eq.s32.totalorder %s704_s17, 0 }
  0x2e   : > { %s980_s28 = smov (%p34_p1, %s32_s28), 0  ;;  %p966_p8 = scmp.ne.s32.totalorder %s960_s21, 0 }
  0x2f   : > { %p824_p6 = por %p47_p4, %p46_p2  ;;  %s36_s27 = ssub.s32 %s700_s16, %s980_s28 }
  0x30   : > { %p830_p10 = por %p966_p8, %p46_p2  ;;  %p503_p12 = scmp.lt.s32.totalorder %s704_s17, 2 }
  0x31   : > { %p37_p11 = scmp.eq.s32.totalorder %s36_s27, 0  ;;  %s177_s26 = sand.u32 1, %s692_s14  }
  0x32   : > { %s448_s4 = sshll.u32 %s177_s26, 3  ;;  %s449_s6 = sshll.u32 %s700_s16, 7 }
  0x33   : > { %s839_s5 = scalar_select %p37_p11, %s692_s14, %s39_s25  }
  0x34   : > { %s845_s9 = scalar_lea.hbm %s951_s0, %s449_s6  ;;  %s181_s21 = scalar_lea.vmem [#allocation2], %s448_s4 }
  0x35   : > { %s188_s10 = sshll.u32 %s181_s21, 4  ;;  %p851_p13 = pnand %p503_p12, %p824_p6  ;;  %s847_s10 = int_to_ptr.vmem [resolvable:$true] %s188_s10 }
  0x36   : > { %s178_s18 = scalar_lea.sflag [#allocation3], %s177_s26  ;;  %s588_s19 = scalar_lea.hbm %s845_s9, 128 }
  0x37   : > { %p589_p0 = scmp.ne.s32.totalorder %s845_s9, %s588_s19  ;;  %p590_p3 = pneg %p851_p13 }
  0x38   : > { %s593_s4 = scalar_lea.hbm %s951_s0, 256  ;;  %p594_p9 = scmp.lt.u32.totalorder %s845_s9, %s951_s0 }
  0x39   : > { %p591_p5 = pnand %p590_p3, %p589_p0  ;;  %p595_p1 = scmp.lt.u32.totalorder %s593_s4, %s588_s19 }
  0x3a   : > { %p597_p4 = scmp.lt.u32.totalorder %s588_s19, %s845_s9 }
  0x3b   : > { %p592_p7 = pneg %p591_p5  ;;  %p596_p2 = por %p595_p1, %p594_p9 }
  0x3d   : > { %p598_p6 = por %p597_p4, %p596_p2 }
  0x3f   : > { %p599_p8 = pnand %p598_p6, %p592_p7 }
  0x41   : > { %602 = shalt.err (!%p599_p8)
}
  0x42   : > { %s603_s26 = scalar_lea.vmem %s847_s10, 128  ;;  %s709_s7 = smov [#allocation2]  }
  0x43   : > { %p604_p12 = scmp.ne.s32.totalorder %s847_s10, %s603_s26  ;;  %s608_s8 = sshll.u32 %s709_s7, 4  ;;  %s609_s8 = int_to_ptr.vmem [resolvable:$false] %s608_s8 }
  0x44   : > { %s610_s21 = scalar_lea.vmem %s609_s8, 256  ;;  %p611_p5 = scmp.lt.s32.totalorder %s847_s10, %s609_s8 }
  0x45   : > { %p606_p11 = pnand %p604_p12, %p590_p3  ;;  %p612_p9 = scmp.lt.s32.totalorder %s610_s21, %s603_s26 }
  0x47   : > { %p607_p0 = pneg %p606_p11  ;;  %p613_p1 = por %p612_p9, %p611_p5 }
  0x49   : > { %p614_p2 = pnand %p613_p1, %p607_p0 }
  0x4b   : > { %617 = shalt.err (!%p614_p2)
}
  0x4c   : > { %497 = dma.hbm_to_vmem [thread:$0]  (!%p851_p13), %s845_s9, 128, %s847_s10, %s178_s18  }
  0x4d   : > { %p969_p7 = scmp.ne.s32.totalorder %s963_s24, 0 }
  0x4e   : > { %s883_s19 = sand.u32 (!%p969_p7), 1, %s688_s13   ;;  %p970_p3 = scmp.ne.s32.totalorder (!%p969_p7), %s961_s22, 0 }
  0x4f   : > { %197 = sbr.rel (%p969_p7) target bundleno = 329 (0x149), region = 32  ;;  %s451_s25 = sshll.u32 (!%p969_p7), %s883_s19, 3 }
  0x50   : > { %s200_s27 = scalar_lea.sflag (!%p969_p7), [#allocation3], %s883_s19  ;;  %s203_s4 = scalar_lea.vmem (!%p969_p7), [#allocation2], %s451_s25 }
  0x56   : > { %671 = dma.done.wait (%p970_p3), %s200_s27, 128  }
  0x57   : > { %673 = vsyncadd (%p970_p3), %s200_s27, 4294967168  ;;  %p971_p4 = scmp.ne.s32.totalorder %s959_s20, 0 }
  0x59   : > { %675 = dma.done.wait (%p971_p4), [#allocation6], 512  }
  0x5a   : > { %677 = vsyncadd (%p971_p4), [#allocation6], 4294966784  ;;  %v710_v0 = vmov 0.0|0.0   ;;  %vm711_vm0 = vmmov 0   ;;  %v712_v1 = vmov 0.0   ;;  %v237_v2 = vld [vmem:[#allocation5] sm:$0xff] }
  0x5b   : > { %476 = vmatprep.subr.bf16.mxu0 %v710_v0  ;;  %473 = vmatprep.mubr.msk.f32.mxu0 %vm711_vm0, %v712_v1  ;;  %v238_v3 = vld [vmem:[#allocation5 + $0x8] sm:$0xff]  ;;  %v239_v4 = vld [vmem:[#allocation5 + $0x10] sm:$0xff]  ;;  %v240_v6 = vld [vmem:[#allocation5 + $0x18] sm:$0xff]  ;;  %vm248_vm1 = vcmask 261120   ;;  %s457_s24 = sshll.u32 %s696_s15, 7  ;;  %s232_s9 = scalar_lea.vmem [#allocation7], %s451_s25 }
  0x5c   : > { %v477_v5 = vpack.c.bf16 %v238_v3, %v237_v2  ;;  %v480_v7 = vpack.c.bf16 %v240_v6, %v239_v4  ;;  %v236_v8 = vld [vmem:[%s203_s4] sm:$0xff]  ;;  %s339_s10 = sshll.u32 %s232_s9, 4  ;;  %vm322_vm2 = vcmask 523264   ;;  %s902_s29 = scalar_lea.hbm %s954_s3, %s457_s24  ;;  %s904_s10 = int_to_ptr.vmem [resolvable:$true] %s339_s10 }
  0x5d   : > { %v454_v9 = vld [vmem:[%s953_s2] ss:$0 sm:$0xff]  ;;  %s325_s6 = scalar_lea.sflag [#allocation4], %s883_s19  ;;  %s618_s26 = scalar_lea.vmem %s904_s10, 128 }
  0x5e   : > { %478 = vmatpush3.bf16.msra.mxu0 %v477_v5  ;;  %p619_p13 = scmp.ne.s32.totalorder %s904_s10, %s618_s26  ;;  %s713_s15 = smov [#allocation7]  }
  0x5f   : > { %479 = vmatprep.subr.bf16.mxu0 %v710_v0  ;;  %s622_s7 = sshll.u32 %s713_s15, 4  ;;  %s623_s7 = int_to_ptr.vmem [resolvable:$false] %s622_s7 }
  0x60   : > { %p620_p6 = pnand %p619_p13, %p830_p10  ;;  %s624_s8 = scalar_lea.vmem %s623_s7, 256 }
  0x61   : > { %p625_p12 = scmp.lt.s32.totalorder %s904_s10, %s623_s7  ;;  %p626_p11 = scmp.lt.s32.totalorder %s624_s8, %s618_s26 }
  0x62   : > { %481 = vmatpush3.bf16.msra.mxu0 %v480_v7  ;;  %p621_p8 = pneg %p620_p6 }
  0x63   : > { %p627_p0 = por %p626_p11, %p625_p12 }
  0x65   : > { %474 = vmatmul.mubr.msk.f32.vlgmr.msra.gmra.mrb[0].mxu0 %vm248_vm1, %v236_v8  ;;  %p628_p5 = pnand %p627_p0, %p621_p8 }
 0x138   : > { %v318_v10 = vpop.f32.mrb[0].mxu0 }
 0x139   : > { %v319_v11 = vadd.f32 %v454_v9, %v318_v10  ;;  %v475_v12 = vpop.f32.mrb[1].mxu0 }
 0x13b   : > { %323 = vst.msk [vmem:[%s232_s9] sm:$0xff] %vm322_vm2, %v319_v11 }
 0x13c   : > { %631 = shalt.err (!%p628_p5)
}
 0x13d   : > { %s632_s21 = scalar_lea.hbm %s902_s29, 128  ;;  %s636_s27 = scalar_lea.hbm %s954_s3, 256 }
 0x13e   : > { %p633_p9 = scmp.ne.s32.totalorder %s902_s29, %s632_s21  ;;  %p637_p7 = scmp.lt.u32.totalorder %s902_s29, %s954_s3 }
 0x13f   : > { %p638_p3 = scmp.lt.u32.totalorder %s636_s27, %s632_s21  ;;  %p640_p13 = scmp.lt.u32.totalorder %s632_s21, %s902_s29 }
 0x140   : > { %p634_p1 = pnand %p633_p9, %p830_p10 }
 0x141   : > { %p639_p4 = por %p638_p3, %p637_p7 }
 0x142   : > { %p635_p2 = pneg %p634_p1 }
 0x143   : > { %p641_p6 = por %p640_p13, %p639_p4 }
 0x145   : > { %p642_p8 = pnand %p641_p6, %p635_p2 }
 0x147   : > { %645 = shalt.err (!%p642_p8)
}
 0x148   : > { %488 = dma.vmem_to_hbm [thread:$0]  (%p830_p10), %s904_s10, 128, %s902_s29, %s325_s6  }
 0x149 PF: > { %s351_s22 = sand.u32 1, %s684_s12   ;;  %p972_p12 = scmp.ne.s32.totalorder %s962_s23, 0 }
 0x14a   : > { %p973_p11 = scmp.ge.s32.totalorder %s704_s17, 2  ;;  %s352_s24 = scalar_lea.sflag [#allocation4], %s351_s22 }
 0x14c   : > { %p499_p0 = pnand %p973_p11, %p972_p12 }
 0x14e   : > { %679 = dma.done.wait (!%p499_p0), %s352_s24, 128  }
 0x14f   : > { %681 = vsyncadd (!%p499_p0), %s352_s24, 4294967168  ;;  %s20_s17 = sadd.s32 1, %s704_s17   ;;  %s974_s12 = smov %s688_s13 }
 0x150   : > { %p17_p5 = scmp.ge.s32.totalorder %s20_s17, 4   ;;  %s975_s13 = smov %s692_s14 }
 0x151   : > { %s976_s14 = smov %s839_s5  ;;  %s977_s15 = smov %s700_s16 }
 0x152   : > { %s978_s16 = smov %s980_s28  ;;  %19 = sbr.rel (!%p17_p5) target bundleno = 7 (0x7), region = 85 }
 0x159   :  { %357 = vsyncpa [#allocation3], 1 }
 0x15a   :  { %359 = vsyncpa [#allocation3 + $0x1], 1 }
 0x15b   :  { %360 = vsyncpa [#allocation6], 1 }
 0x15c   :  { %361 = vsyncpa [#allocation4], 1 }
 0x15d   :  { %363 = vsyncpa [#allocation4 + $0x1], 1 }

</bundles_post_ra>
